<compile_context>
chip_gen: v7x
topology: tpu7x:2x2x1
jax: 0.10.0
libtpu: 0.0.40
codegen_flags: <defaults>
</compile_context>

<pallas_src>
import jax
import jax.numpy as jnp
from jax import lax
from jax.experimental import pallas as pl
from jax.experimental.pallas import tpu as pltpu

# ----------------------------- model dimensions ------------------------------
DATA_DIM = 16        # vocabulary size for the Embedding
MIDDLE = 32          # middle_shape
LATENT = 8           # latent_dim
BATCH = 2
SEQ = 8

# ------------------------ packed parameter row offsets ------------------------
# All segments are 32 columns wide; bias rows are padded to 8 rows and fc4 is
# zero-padded from 8 to 32 columns so every slice boundary is a multiple of 8.
R_TABLE = 0
R_W2 = R_TABLE + DATA_DIM        # 16
R_B2 = R_W2 + MIDDLE             # 48
R_W3 = R_B2 + 8                  # 56
R_B3 = R_W3 + MIDDLE             # 88
R_W4 = R_B3 + 8                  # 96
R_B4 = R_W4 + MIDDLE             # 128
N_PACKED_ROWS = R_B4 + 8         # 136


# --------------------------------- kernel ------------------------------------
def simplenet_kernel(idx_ref,      # VMEM (N, 1) int32 token indices
                     params_ref,   # VMEM (N_PACKED_ROWS, MIDDLE) f32 packed params
                     out_ref):     # VMEM (N, MIDDLE) f32 (cols >= LATENT are zero)
    n = idx_ref.shape[0]

    # Embedding gather as a one-hot MXU matmul. Table already has ReLU applied.
    # (Rows with idx >= DATA_DIM become all-zero instead of reading OOB.)
    idx = idx_ref[...]                                            # (N, 1)
    onehot = (lax.broadcasted_iota(jnp.int32, (n, DATA_DIM), 1) == idx
              ).astype(jnp.float32)                               # (N, DATA_DIM)

    table = params_ref[R_TABLE:R_TABLE + DATA_DIM, :]             # relu(embedding)
    w2 = params_ref[R_W2:R_W2 + MIDDLE, :]
    b2 = params_ref[R_B2:R_B2 + 1, :]
    w3 = params_ref[R_W3:R_W3 + MIDDLE, :]
    b3 = params_ref[R_B3:R_B3 + 1, :]
    w4 = params_ref[R_W4:R_W4 + MIDDLE, :]                        # cols >= LATENT are 0
    b4 = params_ref[R_B4:R_B4 + 1, :]                             # cols >= LATENT are 0

    # z = relu(emb(x))  (ReLU folded into the table)
    z = jnp.dot(onehot, table, preferred_element_type=jnp.float32)
    # fc2 -> ReLU
    z = jnp.maximum(jnp.dot(z, w2, preferred_element_type=jnp.float32) + b2, 0.0)
    # fc3 -> ReLU
    z = jnp.maximum(jnp.dot(z, w3, preferred_element_type=jnp.float32) + b3, 0.0)
    # fc4 (no activation); padded columns stay exactly zero.
    out = jnp.dot(z, w4, preferred_element_type=jnp.float32) + b4

    # F.normalize(out, p=2, dim=-1): v / max(||v||, 1e-12)
    # == v * rsqrt(max(||v||^2, 1e-24)); zero-padded cols don't affect the norm.
    sum_sq = jnp.sum(out * out, axis=-1, keepdims=True)
    inv_norm = lax.rsqrt(jnp.maximum(sum_sq, 1e-24))
    out_ref[...] = (out * inv_norm).astype(out_ref.dtype)


# -------------------------------- wrapper -------------------------------------
def pack_params(params):
    """Pack (table, w2, b2, w3, b3, w4, b4) into one (136, 32) f32 buffer."""
    table, w2, b2, w3, b3, w4, b4 = params
    middle = table.shape[1]
    latent = w4.shape[1]

    table_relu = jnp.maximum(table, 0.0)                 # ReLU commutes with gather
    pad_bias = lambda b: jnp.pad(b, ((0, 7), (0, 0)))    # (1, 32) -> (8, 32)
    w4_pad = jnp.pad(w4, ((0, 0), (0, middle - latent)))
    b4_pad = jnp.pad(b4, ((0, 0), (0, middle - latent)))

    packed = jnp.concatenate([
        table_relu,        # rows   0: 16
        w2,                # rows  16: 48
        pad_bias(b2),      # rows  48: 56
        w3,                # rows  56: 88
        pad_bias(b3),      # rows  88: 96
        w4_pad,            # rows  96:128
        pad_bias(b4_pad),  # rows 128:136
    ], axis=0).astype(jnp.float32)
    assert packed.shape == (N_PACKED_ROWS, middle)
    return packed


def simplenet_forward(x_idx, packed_params):
    """x_idx: (B, S) int32 indices.  Returns (B, S, LATENT) float32."""
    B, S = x_idx.shape
    n = B * S
    idx = x_idx.reshape(n, 1).astype(jnp.int32)

    vmem = pl.BlockSpec(memory_space=pltpu.MemorySpace.VMEM)
    out = pl.pallas_call(
        simplenet_kernel,
        out_shape=jax.ShapeDtypeStruct((n, MIDDLE), jnp.float32),
        in_specs=[vmem, vmem],
        out_specs=pl.BlockSpec(memory_space=pltpu.MemorySpace.VMEM),
    )(idx, packed_params)

    # TODO(synk): if B*S grows to thousands of rows, add a 'parallel' row-block
    # grid axis (weights resident via constant index_map) and a 128-lane-dense
    # output slab instead of this single-shot call.
    return out[:, :LATENT].reshape(B, S, LATENT)


# ------------------------- deterministic parameter init -----------------------
def init_params(key):
    ks = jax.random.split(key, 7)
    # nn.Embedding default init: N(0, 1)
    table = jax.random.normal(ks[0], (DATA_DIM, MIDDLE), jnp.float32)

    def linear(kw, kb, fan_in, fan_out):
        bound = 1.0 / jnp.sqrt(fan_in)
        w = jax.random.uniform(kw, (fan_in, fan_out), jnp.float32, -bound, bound)
        b = jax.random.uniform(kb, (1, fan_out), jnp.float32, -bound, bound)
        return w, b

    w2, b2 = linear(ks[1], ks[2], MIDDLE, MIDDLE)
    w3, b3 = linear(ks[3], ks[4], MIDDLE, MIDDLE)
    w4, b4 = linear(ks[5], ks[6], MIDDLE, LATENT)
    return (table, w2, b2, w3, b3, w4, b4)


def reference_forward(x_idx, params):
    table, w2, b2, w3, b3, w4, b4 = params
    z = jnp.maximum(table[x_idx], 0.0)
    z = jnp.maximum(z @ w2 + b2[0], 0.0)
    z = jnp.maximum(z @ w3 + b3[0], 0.0)
    out = z @ w4 + b4[0]
    norm = jnp.sqrt(jnp.sum(out * out, axis=-1, keepdims=True))
    return out / jnp.maximum(norm, 1e-12)


# ---------------------------------- main ---------------------------------------
if __name__ == "__main__":
    key = jax.random.PRNGKey(0)
    k_params, k_x = jax.random.split(key)
    params = init_params(k_params)
    packed = pack_params(params)
    x = jax.random.randint(k_x, (BATCH, SEQ), 0, DATA_DIM, dtype=jnp.int32)

    out = simplenet_forward(x, packed)
    out = jax.block_until_ready(out)

    ref = reference_forward(x, params)
    assert out.shape == (BATCH, SEQ, LATENT)
    assert jnp.allclose(out, ref, atol=1e-5, rtol=1e-5)

    print("KERNEL_OK")
</pallas_src>

<mosaic_0001>
module attributes {stable_mosaic.version = 11 : i64} {
  func.func @simplenet_kernel(%arg0: memref<16x1xi32, #tpu.memory_space<vmem>>, %arg1: memref<136x32xf32, #tpu.memory_space<vmem>>, %arg2: memref<16x32xf32, #tpu.memory_space<vmem>>) attributes {dimension_semantics = [], scalar_prefetch = 0 : i64, scratch_operands = 0 : i64, tpu.core_type = #tpu.core_type<tc>} {
    %c0 = arith.constant 0 : index
    %c0_0 = arith.constant 0 : index
    %0 = vector.load %arg0[%c0, %c0_0] : memref<16x1xi32, #tpu.memory_space<vmem>>, vector<16x1xi32>
    %1 = tpu.iota {dimensions = array<i32: 1>} : vector<16x16xi32>
    %2 = vector.broadcast %0 : vector<16x1xi32> to vector<16x16xi32>
    %3 = arith.cmpi eq, %1, %2 : vector<16x16xi32>
    %4 = arith.extui %3 : vector<16x16xi1> to vector<16x16xi32>
    %5 = arith.sitofp %4 : vector<16x16xi32> to vector<16x16xf32>
    %c0_1 = arith.constant 0 : index
    %c0_2 = arith.constant 0 : index
    %6 = vector.load %arg1[%c0_1, %c0_2] : memref<136x32xf32, #tpu.memory_space<vmem>>, vector<16x32xf32>
    %c16 = arith.constant 16 : index
    %c0_3 = arith.constant 0 : index
    %7 = vector.load %arg1[%c16, %c0_3] : memref<136x32xf32, #tpu.memory_space<vmem>>, vector<32x32xf32>
    %c48 = arith.constant 48 : index
    %c0_4 = arith.constant 0 : index
    %8 = vector.load %arg1[%c48, %c0_4] : memref<136x32xf32, #tpu.memory_space<vmem>>, vector<1x32xf32>
    %c56 = arith.constant 56 : index
    %c0_5 = arith.constant 0 : index
    %9 = vector.load %arg1[%c56, %c0_5] : memref<136x32xf32, #tpu.memory_space<vmem>>, vector<32x32xf32>
    %c88 = arith.constant 88 : index
    %c0_6 = arith.constant 0 : index
    %10 = vector.load %arg1[%c88, %c0_6] : memref<136x32xf32, #tpu.memory_space<vmem>>, vector<1x32xf32>
    %c96 = arith.constant 96 : index
    %c0_7 = arith.constant 0 : index
    %11 = vector.load %arg1[%c96, %c0_7] : memref<136x32xf32, #tpu.memory_space<vmem>>, vector<32x32xf32>
    %c128 = arith.constant 128 : index
    %c0_8 = arith.constant 0 : index
    %12 = vector.load %arg1[%c128, %c0_8] : memref<136x32xf32, #tpu.memory_space<vmem>>, vector<1x32xf32>
    %cst = arith.constant dense<0.000000e+00> : vector<16x32xf32>
    %13 = tpu.matmul %5, %6, %cst {dimension_numbers = #tpu.dot_dimension_numbers<[1], [0], [0], [1], [0, 0, 1, 1], [], []>} : vector<16x16xf32>, vector<16x32xf32>, vector<16x32xf32> -> vector<16x32xf32>
    %cst_9 = arith.constant dense<0.000000e+00> : vector<16x32xf32>
    %14 = tpu.matmul %13, %7, %cst_9 {dimension_numbers = #tpu.dot_dimension_numbers<[1], [0], [0], [1], [0, 0, 1, 1], [], []>} : vector<16x32xf32>, vector<32x32xf32>, vector<16x32xf32> -> vector<16x32xf32>
    %15 = vector.broadcast %8 : vector<1x32xf32> to vector<16x32xf32>
    %16 = arith.addf %14, %15 : vector<16x32xf32>
    %cst_10 = arith.constant 0.000000e+00 : f32
    %17 = vector.broadcast %cst_10 : f32 to vector<16x32xf32>
    %18 = arith.maximumf %16, %17 : vector<16x32xf32>
    %cst_11 = arith.constant dense<0.000000e+00> : vector<16x32xf32>
    %19 = tpu.matmul %18, %9, %cst_11 {dimension_numbers = #tpu.dot_dimension_numbers<[1], [0], [0], [1], [0, 0, 1, 1], [], []>} : vector<16x32xf32>, vector<32x32xf32>, vector<16x32xf32> -> vector<16x32xf32>
    %20 = vector.broadcast %10 : vector<1x32xf32> to vector<16x32xf32>
    %21 = arith.addf %19, %20 : vector<16x32xf32>
    %cst_12 = arith.constant 0.000000e+00 : f32
    %22 = vector.broadcast %cst_12 : f32 to vector<16x32xf32>
    %23 = arith.maximumf %21, %22 : vector<16x32xf32>
    %cst_13 = arith.constant dense<0.000000e+00> : vector<16x32xf32>
    %24 = tpu.matmul %23, %11, %cst_13 {dimension_numbers = #tpu.dot_dimension_numbers<[1], [0], [0], [1], [0, 0, 1, 1], [], []>} : vector<16x32xf32>, vector<32x32xf32>, vector<16x32xf32> -> vector<16x32xf32>
    %25 = vector.broadcast %12 : vector<1x32xf32> to vector<16x32xf32>
    %26 = arith.addf %24, %25 : vector<16x32xf32>
    %27 = arith.mulf %26, %26 : vector<16x32xf32>
    %cst_14 = arith.constant dense<0.000000e+00> : vector<16xf32>
    %28 = vector.multi_reduction <add>, %27, %cst_14 [1] : vector<16x32xf32> to vector<16xf32>
    %29 = vector.shape_cast %28 : vector<16xf32> to vector<16x1xf32>
    %cst_15 = arith.constant 1.000000e-24 : f32
    %30 = vector.broadcast %cst_15 : f32 to vector<16x1xf32>
    %31 = arith.maximumf %29, %30 : vector<16x1xf32>
    %32 = math.rsqrt %31 : vector<16x1xf32>
    %33 = vector.broadcast %32 : vector<16x1xf32> to vector<16x32xf32>
    %34 = arith.mulf %26, %33 : vector<16x32xf32>
    %c0_16 = arith.constant 0 : index
    %c0_17 = arith.constant 0 : index
    %35 = vector.load %arg2[%c0_16, %c0_17] : memref<16x32xf32, #tpu.memory_space<vmem>>, vector<16x32xf32>
    tpu.vector_store %arg2[%c0_16, %c0_17], %34 {strides = array<i32>} : memref<16x32xf32, #tpu.memory_space<vmem>>, vector<16x32xf32>,
    return
  }
}

</mosaic_0001>

<bundles_post_ra>
// kernel: tpu_custom_call.1
= control target key start
LH: loop header
LB: loop body
LE: loop exit
PB: predicated region body
PF: predicated region fallthrough
CT: control target
= control target key end

     0   :  { %s655_s0 = inlined_call_operand.vmem [shape: s32[16,1], index: 0, kind: input, shape index: {}]   ;;  %s656_s1 = inlined_call_operand.vmem [shape: f32[136,32], index: 1, kind: input, shape index: {}]   ;;  %s657_s2 = inlined_call_operand.hbm [shape: f32[16,32], index: 2, kind: output, shape index: {}]  }
   0x1   :  { %v12_v0 = vld [vmem:[%s655_s0] sm:$0xff] }
   0x2   :  { %7 = vsyncpa [#allocation3], 0  ;;  %v556_v1 = vmov 0   ;;  %v28_v2 = vld [vmem:[%s656_s1] sm:$0xff]  ;;  %v29_v3 = vld [vmem:[%s656_s1 + $0x8] sm:$0xff]  ;;  %v14_v12 = vlaneseq  ;;  %vm45_vm0 = vcmask 130048  }
   0x3   :  { %527 = vset.pattern.permute.xlu0 %v556_v1  ;;  %v494_v4 = vpack.c.bf16 %v29_v3, %v28_v2  ;;  %v13_v5 = vld [vmem:[%s655_s0 + $0x8] sm:$0xff]  ;;  %v30_v6 = vld [vmem:[%s656_s1 + $0x10] sm:$0xff]  ;;  %v31_v7 = vld [vmem:[%s656_s1 + $0x18] sm:$0xff]  ;;  %v557_v15 = vmov 0.0   ;;  %vm131_vm3 = vcmask 261120  }
   0x4   :  { %17 = vperm.xlu0 %527, %v12_v0   ;;  %v32_v8 = vld [vmem:[%s656_s1 + $0x20] sm:$0xff]  ;;  %v498_v9 = vpack.c.bf16 %v31_v7, %v30_v6  ;;  %v33_v10 = vld [vmem:[%s656_s1 + $0x28] sm:$0xff]  ;;  %v15_v13 = vand.u32 127, %v14_v12  ;;  %v35_v19 = vld [vmem:[%s656_s1 + $0x38] sm:$0xff] }
   0x5   :  { %495 = vmatprep.subr.bf16.mxu0 %v494_v4  ;;  %v502_v11 = vpack.c.bf16 %v33_v10, %v32_v8  ;;  %v36_v20 = vld [vmem:[%s656_s1 + $0x40] sm:$0xff]  ;;  %v37_v24 = vld [vmem:[%s656_s1 + $0x48] sm:$0xff]  ;;  %v38_v25 = vld [vmem:[%s656_s1 + $0x50] sm:$0xff] }
   0x6   :  { %497 = vmatpush3.bf16.msra.mxu0 %v494_v4  ;;  %499 = vmatprep.subr.bf16.mxu1 %v498_v9  ;;  %v506_v21 = vpack.c.bf16 %v36_v20, %v35_v19  ;;  %v510_v26 = vpack.c.bf16 %v38_v25, %v37_v24  ;;  %v40_v27 = vld [vmem:[%s656_s1 + $0x60] sm:$0xff]  ;;  %v41_v28 = vld [vmem:[%s656_s1 + $0x68] sm:$0xff]  ;;  %v423_v30 = vld [vmem:[%s656_s1 + $0x30] ss:$0 sm:$0xff] }
   0x7   :  { %501 = vmatpush3.bf16.msra.mxu1 %v498_v9  ;;  %v514_v29 = vpack.c.bf16 %v41_v28, %v40_v27  ;;  %v42_v37 = vld [vmem:[%s656_s1 + $0x70] sm:$0xff]  ;;  %v43_v38 = vld [vmem:[%s656_s1 + $0x78] sm:$0xff]  ;;  %v429_v47 = vld [vmem:[%s656_s1 + $0x80] ss:$0 sm:$0xff] }
   0x8   :  { %20 = vperm.xlu0 %527, %v13_v5   ;;  %503 = vmatprep.subr.bf16.mxu1 %v502_v11  ;;  %v518_v39 = vpack.c.bf16 %v43_v38, %v42_v37  ;;  %v426_v40 = vld [vmem:[%s656_s1 + $0x58] ss:$0 sm:$0xff]  ;;  %s558_s1 = smov [#allocation2]  }
   0x9   :  { %507 = vmatprep.subr.bf16.mxu0 %v506_v21  ;;  %s408_s18 = sshll.u32 %s558_s1, 4  ;;  %s409_s18 = int_to_ptr.vmem [resolvable:$true] %s408_s18 }
   0xa   :  { %s532_s19 = scalar_lea.vmem %s409_s18, 256  ;;  %p537_p1 = scmp.lt.s32.totalorder %s409_s18, %s409_s18 }
   0xb   :  { %505 = vmatpush3.bf16.msra.mxu1 %v502_v11  ;;  %p533_p0 = scmp.ne.s32.totalorder %s409_s18, %s532_s19  ;;  %p538_p2 = scmp.lt.s32.totalorder %s532_s19, %s532_s19 }
   0xc   :  { %515 = vmatprep.subr.bf16.mxu1 %v514_v29 }
   0xd   :  { %p539_p3 = por %p538_p2, %p537_p1 }
   0xf   :  { %p540_p4 = pnand %p539_p3, %p533_p0 }
  0x83   :  { %v18_v14 = vpop.permute.xlu0 %17 }
  0x84   :  { %vm22_vm1 = vcmp.eq.s32.totalorder %v15_v13, %v18_v14 }
  0x85   :  { %v419_v16 = vsel %vm22_vm1, 1.0, %v557_v15 }
  0x86   :  { %458 = vmatprep.mubr.msk.f32.mxu0 %vm45_vm0, %v419_v16 }
  0x87   :  { %v21_v17 = vpop.permute.xlu0 %20 }
  0x88   :  { %vm23_vm2 = vcmp.eq.s32.totalorder %v15_v13, %v21_v17 }
  0x89   :  { %v420_v18 = vsel %vm23_vm2, 1.0, %v557_v15 }
  0x8a   :  { %459 = vmatmul.mubr.msk.f32.vlgmr.msra.gmra.mrb[0].mxu0 %vm45_vm0, %v420_v18 }
  0x8b   :  { %509 = vmatpush3.bf16.msra.mxu0 %v506_v21 }
  0x8c   :  { %511 = vmatprep.subr.bf16.mxu0 %v510_v26 }
  0x8f   :  { %513 = vmatpush3.bf16.msra.mxu0 %v510_v26 }
 0x15d   :  { %v460_v22 = vpop.f32.mrb[0].mxu0 }
 0x15e   :  { %v118_v23 = vpop.f32.mrb[1].mxu0 }
 0x15f   :  { %469 = vmatprep.mubr.msk.f32.mxu1 %vm131_vm3, %v118_v23 }
 0x160   :  { %470 = vmatmul.mubr.msk.f32.vlgmr.msra.gmra.mrb[0].mxu1 %vm131_vm3, %v460_v22 }
 0x161   :  { %517 = vmatpush3.bf16.msra.mxu1 %v514_v29 }
 0x162   :  { %519 = vmatprep.subr.bf16.mxu1 %v518_v39 }
 0x165   :  { %521 = vmatpush3.bf16.msra.mxu1 %v518_v39 }
 0x233   :  { %v471_v31 = vpop.f32.mrb[0].mxu1 }
 0x234   :  { %v210_v32 = vadd.f32 %v471_v31, %v423_v30  ;;  %v204_v33 = vpop.f32.mrb[1].mxu1 }
 0x235   :  { %v205_v34 = vadd.f32 %v423_v30, %v204_v33 }
 0x236   :  { %v214_v36 = vmax.f32 %v210_v32, 0.0 }
 0x237   :  { %v213_v35 = vmax.f32 %v205_v34, 0.0 }
 0x239   :  { %480 = vmatprep.mubr.msk.f32.mxu0 %vm131_vm3, %v213_v35 }
 0x23a   :  { %481 = vmatmul.mubr.msk.f32.vlgmr.msra.gmra.mrb[2].mxu0 %vm131_vm3, %v214_v36 }
 0x30d   :  { %v482_v41 = vpop.f32.mrb[2].mxu0 }
 0x30e   :  { %v297_v42 = vadd.f32 %v482_v41, %v426_v40  ;;  %v291_v43 = vpop.f32.mrb[3].mxu0 }
 0x30f   :  { %v292_v44 = vadd.f32 %v426_v40, %v291_v43 }
 0x310   :  { %v301_v46 = vmax.f32 %v297_v42, 0.0 }
 0x311   :  { %v300_v45 = vmax.f32 %v292_v44, 0.0 }
 0x313   :  { %491 = vmatprep.mubr.msk.f32.mxu1 %vm131_vm3, %v300_v45 }
 0x314   :  { %492 = vmatmul.mubr.msk.f32.vlgmr.msra.gmra.mrb[2].mxu1 %vm131_vm3, %v301_v46 }
 0x3e7   :  { %v493_v48 = vpop.f32.mrb[2].mxu1 }
 0x3e8   :  { %v378_v49 = vpop.f32.mrb[3].mxu1  ;;  %v384_v50 = vadd.f32 %v493_v48, %v429_v47 }
 0x3e9   :  { %v379_v51 = vadd.f32 %v429_v47, %v378_v49 }
 0x3ea   :  { %v388_v54 = vmul.f32 %v384_v50, %v384_v50 }
 0x3eb   :  { %v387_v52 = vmul.f32 %v379_v51, %v379_v51 }
 0x3ec   :  { %v392_v55 = vsel %vm131_vm3, %v388_v54, 0.0 }
 0x3ed   :  { %v389_v53 = vsel %vm131_vm3, %v387_v52, 0.0 }
 0x3ee   :  { %390 = vadd.xlane.f32.xlu1 %v389_v53 }
 0x3f2   :  { %393 = vadd.xlane.f32.xlu1 %v392_v55 }
 0x47b   :  { %v391_v56 = vpop.xlane.xlu1 %390 }
 0x47c   :  { %v395_v57 = vmax.f32 %v391_v56, 1e-24 }
 0x47e   :  { %528 = vrsqrt.f32 %v395_v57 }
 0x47f   :  { %v394_v58 = vpop.xlane.xlu1 %393 }
 0x480   :  { %v396_v59 = vmax.f32 %v394_v58, 1e-24 }
 0x482   :  { %530 = vrsqrt.f32 %v396_v59 }
 0x488   :  { %v529_v60 = vpop.eup %528 }
 0x489   :  { %v399_v61 = vmul.f32 %v529_v60, %v379_v51 }
 0x48b   :  { %401 = vst.msk [vmem:[#allocation2] sm:$0xff] %vm131_vm3, %v399_v61 }
 0x48c   :  { %v531_v62 = vpop.eup %530 }
 0x48d   :  { %v400_v63 = vmul.f32 %v531_v62, %v384_v50 }
 0x48f   :  { %402 = vst.msk [vmem:[#allocation2 + $0x8] sm:$0xff] %vm131_vm3, %v400_v63 }
 0x490   :  { %543 = shalt.err (!%p540_p4)
}
 0x491   :  { %s544_s22 = scalar_lea.hbm %s657_s2, 256 }
 0x492   :  { %p545_p5 = scmp.ne.s32.totalorder %s657_s2, %s544_s22  ;;  %p548_p6 = scmp.lt.u32.totalorder %s544_s22, %s657_s2 }
 0x494   :  { %p550_p7 = pnand %p548_p6, %p545_p5 }
 0x496   :  { %553 = shalt.err (!%p550_p7)
}
 0x497   :  { %s559_s26 = smov 128   ;;  %s560_s27 = smov 8  }
 0x498   :  { %414 = dma.vmem_to_hbm [thread:$0]  %s409_s18, 256, %s657_s2, [#allocation3], %s559_s26, %s559_s26, %s560_s27  }
 0x499   :  { %554 = dma.done.wait [#allocation3], 256  }
 0x49a   :  { %555 = vsyncadd [#allocation3], 4294967040 }
 0x49b   :  { %418 = vsyncpa [#allocation3], 1 }

</bundles_post_ra>
